<compile_context>
chip_gen: v5e
topology: v5e:2x2
jax: 0.10.0
libtpu: 0.0.40
codegen_flags: <defaults>
</compile_context>

<pallas_src>
import jax
import jax.numpy as jnp
from jax.experimental import pallas as pl
from jax.experimental.pallas import tpu as pltpu


_DEFAULT_TARGET_BLOCK_BYTES = 4 * 1024 * 1024  # ~85%+ of HBM roofline on v6e
_SMALL_ROW_BYTES = 512                         # below this, widen the S window
_IN_BUFFERS = 3                                # input buffering when grid >= 3
_OUT_BUFFERS = 2                               # default output double-buffer
_VMEM_BUFFER_BUDGET = 36 << 20                 # live in+out buffering target
_VMEM_LIMIT_CAP = 48 << 20                     # < v7x's 64 MiB physical VMEM


def _cls_copy_kernel(x_ref, o_ref):
    # x_ref: (TB, H) — CLS rows only (sequence dim squeezed by the BlockSpec).
    # Pure copy; all the work is in the DMA.
    o_ref[...] = x_ref[...]


def _cls_select_kernel(x_ref, o_ref):
    # x_ref: (TB, S_WIN, H) — small contiguous window of leading sequence rows
    # (tiny-H regime).  Select sequence position 0 on-chip.
    o_ref[...] = x_ref[:, 0, :]


def _plan_tiles(B, S, H, itemsize, target_block_bytes):
    """Pick (tb, s_win, use_window, num_blocks, in_bufs, vmem_limit_bytes)."""
    sublane = max(8, 32 // itemsize)  # 8 f32, 16 bf16, 32 int8 (always >= 8)
    row_bytes = H * itemsize

    # Tiny-H regime: widen the fetched sequence window so each per-batch DMA
    # chunk is contiguous and >= ~512 B, then select row 0 inside the kernel.
    use_window = (row_bytes < _SMALL_ROW_BYTES) and S > 1
    s_win = min(S, sublane) if use_window else 1
    in_row_bytes = s_win * row_bytes

    # Batch rows per block, sized against the (larger) input block.  Keep tb a
    # multiple of the sublane pack, or the full batch, so the (tb, H) output
    # block obeys the (8, 128) tiling rule.
    tb = max(1, target_block_bytes // max(1, in_row_bytes))
    if tb >= B:
        tb = B
    else:
        tb = max(sublane, (tb // sublane) * sublane)
        tb = min(tb, B)

    # Guarantee >= 2 grid steps when B allows, so dimension_semantics
    # ("parallel",) actually puts work on both v7x TensorCores (no-op v5e/v6e).
    if tb >= B and B >= 2 * sublane:
        tb = max(sublane, ((B // 2) // sublane) * sublane)

    # VMEM-budget guard (fixes the "sublane round-up past the scoped limit"
    # failure mode when a single row is multiple MiB): shrink tb — never below
    # one sublane pack — until in+out buffering fits the budget we request.
    def _live_bytes(tb_, in_bufs_):
        return in_bufs_ * tb_ * in_row_bytes + _OUT_BUFFERS * tb_ * row_bytes

    while tb > sublane and _live_bytes(tb, _IN_BUFFERS) > _VMEM_BUFFER_BUDGET:
        tb = max(sublane, ((tb // 2) // sublane) * sublane)

    num_blocks = pl.cdiv(B, tb)
    in_bufs = _IN_BUFFERS if num_blocks >= 3 else 2
    live = _live_bytes(tb, in_bufs)
    vmem_limit = int(min(_VMEM_LIMIT_CAP,
                         max(32 << 20, live * 5 // 4 + (2 << 20))))
    return tb, s_win, use_window, num_blocks, in_bufs, vmem_limit


def cls_pool(x: jax.Array, *,
             target_block_bytes: int = _DEFAULT_TARGET_BLOCK_BYTES) -> jax.Array:
    """Pallas equivalent of the PyTorch CLS module: returns x[:, 0]."""
    B, S, H = x.shape
    itemsize = jnp.dtype(x.dtype).itemsize
    tb, s_win, use_window, num_blocks, in_bufs, vmem_limit = _plan_tiles(
        B, S, H, itemsize, target_block_bytes)

    if use_window:
        kernel = _cls_select_kernel
        in_block_shape = (tb, s_win, H)       # contiguous leading-S window
    else:
        kernel = _cls_copy_kernel
        in_block_shape = (tb, None, H)        # squeezed size-1 seq dim at pos 0

    in_index_map = lambda i: (i, 0, 0)
    if in_bufs > 2:
        # Triple-buffer the strided gather when the grid is long enough.
        try:
            in_spec = pl.BlockSpec(in_block_shape, in_index_map,
                                   pipeline_mode=pl.Buffered(in_bufs))
        except TypeError:  # older BlockSpec without pipeline_mode support
            in_spec = pl.BlockSpec(in_block_shape, in_index_map)
    else:
        in_spec = pl.BlockSpec(in_block_shape, in_index_map)

    return pl.pallas_call(
        kernel,
        out_shape=jax.ShapeDtypeStruct((B, H), x.dtype),
        grid=(num_blocks,),
        in_specs=[in_spec],
        out_specs=pl.BlockSpec((tb, H), lambda i: (i, 0)),
        compiler_params=pltpu.CompilerParams(
            dimension_semantics=("parallel",),   # shard batch tiles across TCs
            vmem_limit_bytes=vmem_limit,          # covers v5e's 16 MiB default
        ),
        cost_estimate=pl.CostEstimate(
            flops=0,
            transcendentals=0,
            bytes_accessed=(B * s_win * H + B * H) * itemsize,  # read + write
        ),
    )(x)


if __name__ == "__main__":
    key = jax.random.PRNGKey(0)
    k1, k2, k3 = jax.random.split(key, 3)

    # 1) Module-shaped smoke test (batch=2, seq=8, hidden=32) — tiny-H path,
    #    single grid step.
    B, S, H = 2, 8, 32
    x = jax.random.normal(k1, (B, S, H), dtype=jnp.float32)
    out = cls_pool(x)
    jax.block_until_ready(out)
    assert out.shape == (B, H) and out.dtype == x.dtype
    assert jnp.array_equal(out, x[:, 0]), "CLS mismatch (tiny-H path)"

    # 2) Large-H squeezed path, multi-step grid + triple-buffered input
    #    (blocks forced small so the test stays tiny).
    B2, S2, H2 = 64, 4, 256
    x2 = jax.random.normal(k2, (B2, S2, H2), dtype=jnp.float32)
    out2 = cls_pool(x2, target_block_bytes=4096)
    jax.block_until_ready(out2)
    assert jnp.array_equal(out2, x2[:, 0]), "CLS mismatch (squeezed path)"

    # 3) Tiny-H windowed path, multi-step grid + triple-buffered input.
    B3, S3, H3 = 32, 16, 32
    x3 = jax.random.normal(k3, (B3, S3, H3), dtype=jnp.float32)
    out3 = cls_pool(x3, target_block_bytes=4096)
    jax.block_until_ready(out3)
    assert jnp.array_equal(out3, x3[:, 0]), "CLS mismatch (windowed path)"

    print("KERNEL_OK")
</pallas_src>

<mosaic_0001>
module attributes {stable_mosaic.version = 11 : i64} {
  func.func @_cls_select_kernel(%arg0: i32, %arg1: memref<2x8x32xf32, #tpu.memory_space<vmem>>, %arg2: memref<2x32xf32, #tpu.memory_space<vmem>>) attributes {dimension_semantics = [#tpu.dimension_semantics<parallel>], iteration_bounds = array<i64: 1>, scalar_prefetch = 0 : i64, scratch_operands = 0 : i64, tpu.core_type = #tpu.core_type<tc>, window_params = [{transform_indices = @transform_0, window_bounds = array<i64: 2, 8, 32>}, {transform_indices = @transform_1, window_bounds = array<i64: 2, 32>}]} {
    %c0 = arith.constant 0 : index
    %c0_0 = arith.constant 0 : index
    %c0_1 = arith.constant 0 : index
    %0 = vector.load %arg1[%c0, %c0_0, %c0_1] : memref<2x8x32xf32, #tpu.memory_space<vmem>>, vector<2x1x32xf32>
    %1 = vector.shape_cast %0 : vector<2x1x32xf32> to vector<2x32xf32>
    %c0_2 = arith.constant 0 : index
    %c0_3 = arith.constant 0 : index
    %2 = vector.load %arg2[%c0_2, %c0_3] : memref<2x32xf32, #tpu.memory_space<vmem>>, vector<2x32xf32>
    tpu.vector_store %arg2[%c0_2, %c0_3], %1 {strides = array<i32>} : memref<2x32xf32, #tpu.memory_space<vmem>>, vector<2x32xf32>,
    return
  }
  func.func @transform_0(%arg0: i32) -> (i32, i32, i32) {
    %c0_i32 = arith.constant 0 : i32
    %c0_i32_0 = arith.constant 0 : i32
    %c0_i32_1 = arith.constant 0 : i32
    return %arg0, %c0_i32, %c0_i32_0 : i32, i32, i32
  }
  func.func @transform_1(%arg0: i32) -> (i32, i32) {
    %c0_i32 = arith.constant 0 : i32
    %c0_i32_0 = arith.constant 0 : i32
    return %arg0, %c0_i32 : i32, i32
  }
}

</mosaic_0001>

<bundles_post_ra>
// kernel: tpu_custom_call.1
= control target key start
LH: loop header
LB: loop body
LE: loop exit
PB: predicated region body
PF: predicated region fallthrough
CT: control target
= control target key end

     0   :  { %6 = vsyncpa [#allocation3], 0  ;;  %s128_s0 = inlined_call_operand.hbm [shape: f32[2,8,32], index: 0, kind: input, shape index: {}]   ;;  %s129_s1 = inlined_call_operand.hbm [shape: f32[2,32], index: 1, kind: output, shape index: {}]  }
   0x1   :  { %7 = vsyncpa [#allocation4], 0  ;;  %s12_s8 = sshll.u32 %s128_s0, 4  ;;  %s108_s9 = smov [#allocation2]   ;;  %s13_s8 = int_to_ptr.hbm [resolvable:$true] %s12_s8 }
   0x2   :  { %s14_s10 = sshll.u32 %s108_s9, 4  ;;  %s109_s11 = smov 128   ;;  %s15_s10 = int_to_ptr.vmem [resolvable:$true] %s14_s10 }
   0x3   :  { %s110_s12 = smov 8  }
   0x4   :  { %20 = dma.hbm_to_vmem [thread:$0]  %s13_s8, 256, %s15_s10, [#allocation3], %s109_s11, %s109_s11, %s110_s12  }
   0x5   :  { %104 = dma.done.wait [#allocation3], 256  }
   0x6   :  { %105 = vsyncadd [#allocation3], 4294967040  ;;  %s111_s13 = smov [#allocation5]   ;;  %s42_s17 = sshll.u32 %s129_s1, 4  ;;  %v25_v0 = vld [vmem:[#allocation2] sm:$0x1]  ;;  %s43_s17 = int_to_ptr.hbm [resolvable:$true] %s42_s17 }
   0x7   :  { %s40_s14 = sshll.u32 %s111_s13, 4  ;;  %v26_v1 = vld [vmem:[#allocation2 + $0x8] sm:$0x1]  ;;  %vm30_vm0 = vcmask 1041409   ;;  %vm33_vm1 = vcmask 254976   ;;  %s41_s14 = int_to_ptr.vmem [resolvable:$true] %s40_s14 }
   0x8   :  { %v29_v2 = vrot.slane %v26_v1, 7 }
   0xa   :  { %v31_v3 = vsel %vm30_vm0, %v29_v2, %v25_v0 }
   0xb   :  { %34 = vst.msk [vmem:[#allocation5] sm:$0x3] %vm33_vm1, %v31_v3 }
   0xc   :  { %45 = dma.vmem_to_hbm [thread:$0]  %s41_s14, 32, %s43_s17, [#allocation4]  }
   0xd   :  { %106 = dma.done.wait [#allocation4], 32  }
   0xe   :  { %107 = vsyncadd [#allocation4], 4294967264 }
   0xf   :  { %50 = vsyncpa [#allocation3], 1 }
  0x10   :  { %51 = vsyncpa [#allocation4], 1 }

</bundles_post_ra>
